<compile_context>
chip_gen: v7x
topology: tpu7x:2x2x1
jax: 0.10.0
libtpu: 0.0.40
codegen_flags: <defaults>
</compile_context>

<pallas_src>
import jax
import jax.numpy as jnp
import numpy as np
from jax.experimental import pallas as pl
from jax.experimental.pallas import tpu as pltpu


def cnn_kernel(x_ref, wc_ref, cb_ref, fw_ref, fb_ref, o_ref):
    """One batch tile per grid step; everything is 2-D, MXU + VPU only.

       x_ref : (TB, L*Cin)        flattened input rows (blocked over batch)
       wc_ref: (L*Cin, NL*Cout)   Toeplitz-expanded conv weight (VMEM-resident)
       cb_ref: (1, NL*Cout)       conv bias tiled to the flat conv layout (resident)
       fw_ref: (NL*Cout, 1)       fc weight permuted to the flat layout (resident)
       fb_ref: (1,)               fc bias scalar (SMEM)
       o_ref : (TB, 1)            logits
    """
    # Conv1d as a single MXU contraction (depth L*Cin), f32 accumulation.
    conv = jnp.dot(x_ref[...], wc_ref[...], preferred_element_type=jnp.float32)
    # Bias + ReLU on the VPU.  Dropout(p=0.0) is the identity.
    h = jnp.maximum(conv + cb_ref[...], 0.0)
    # fc head as a second MXU contraction (depth NL*Cout).
    logits = jnp.dot(h, fw_ref[...], preferred_element_type=jnp.float32)
    o_ref[...] = logits + fb_ref[0]


def cnn_forward(x, conv_w, conv_b, fc_w, fc_b, *, block_b=8192):
    """x: (B, L, Cin) f32.  Torch-layout params:
       conv_w (Cout, Cin, K), conv_b (Cout,), fc_w (1, Cout*new_len), fc_b (1,)."""
    B, L, Cin = x.shape
    Cout, _, K = conv_w.shape
    NL = L - K + 1                                                     # new_len

    # ---- parameter layout plumbing (plain JAX on tiny weights, traced once) ----
    # Wc[l*Cin + cin, t*Cout + c] = conv_w[c, cin, l - t] for 0 <= l - t < K, else 0.
    w_kio = jnp.transpose(conv_w, (2, 1, 0)).astype(jnp.float32)       # (K, Cin, Cout)
    wc4 = jnp.zeros((L, Cin, NL, Cout), jnp.float32)
    for t in range(NL):                                                # NL is small & static
        wc4 = wc4.at[t:t + K, :, t, :].set(w_kio)
    wc = wc4.reshape(L * Cin, NL * Cout)                               # (L*Cin, NL*Cout)

    cb = jnp.tile(conv_b.astype(jnp.float32), NL).reshape(1, NL * Cout)
    # torch flatten index = c*NL + t  ->  flat-layout index t*Cout + c
    fw = fc_w.reshape(Cout, NL).T.reshape(NL * Cout, 1).astype(jnp.float32)
    fb = fc_b.reshape(1).astype(jnp.float32)

    xf = x.reshape(B, L * Cin).astype(jnp.float32)                     # contiguous, free

    # ---- batch tile: whole batch if small, else a multiple-of-8 tile whose
    # double-buffered blocks (~2 x TB*L*Cin*4 B) stay tiny relative to VMEM ----
    TB = B if B <= block_b else (block_b // 8) * 8
    grid = (pl.cdiv(B, TB),)

    return pl.pallas_call(
        cnn_kernel,
        out_shape=jax.ShapeDtypeStruct((B, 1), jnp.float32),
        grid=grid,
        in_specs=[
            pl.BlockSpec((TB, L * Cin), lambda i: (i, 0)),             # blocked over batch
            pl.BlockSpec((L * Cin, NL * Cout), lambda i: (0, 0)),      # resident conv weight
            pl.BlockSpec((1, NL * Cout), lambda i: (0, 0)),            # resident conv bias
            pl.BlockSpec((NL * Cout, 1), lambda i: (0, 0)),            # resident fc weight
            pl.BlockSpec(memory_space=pltpu.MemorySpace.SMEM),         # fc bias scalar
        ],
        out_specs=pl.BlockSpec((TB, 1), lambda i: (i, 0)),
        compiler_params=pltpu.CompilerParams(
            dimension_semantics=("parallel",)),                        # 2 TCs on v7x
    )(xf, wc, cb, fw, fb)


def cnn_reference(x, conv_w, conv_b, fc_w, fc_b):
    """Pure-JAX reference mirroring the PyTorch forward (eval mode)."""
    xt = jnp.transpose(x, (0, 2, 1))                                   # (B, Cin, L)
    out = jax.lax.conv_general_dilated(
        xt, conv_w, window_strides=(1,), padding='VALID',
        dimension_numbers=('NCH', 'OIH', 'NCH'))                       # (B, Cout, NL)
    out = out + conv_b[None, :, None]
    out = jnp.maximum(out, 0.0)
    B, Cout, nl = out.shape
    flat = out.reshape(B, Cout * nl)                                   # torch flatten order
    return flat @ fc_w.T + fc_b[None, :]


if __name__ == "__main__":
    # Shapes consistent with the module's forward:
    #   x: (batch=2, seq_len=8, input_size=4), num_channels=16, kernel_size=3
    B, L, Cin = 2, 8, 4
    Cout, K = 16, 3
    NL = L - K + 1

    key = jax.random.PRNGKey(0)
    kx, kcw, kcb, kfw, kfb = jax.random.split(key, 5)

    x = jax.random.normal(kx, (B, L, Cin), dtype=jnp.float32)
    conv_w = jax.random.normal(kcw, (Cout, Cin, K), dtype=jnp.float32) * 0.2
    conv_b = jax.random.normal(kcb, (Cout,), dtype=jnp.float32) * 0.1
    fc_w = jax.random.normal(kfw, (1, Cout * NL), dtype=jnp.float32) * 0.1
    fc_b = jax.random.normal(kfb, (1,), dtype=jnp.float32) * 0.1

    logits = jax.block_until_ready(cnn_forward(x, conv_w, conv_b, fc_w, fc_b))
    ref = jax.block_until_ready(cnn_reference(x, conv_w, conv_b, fc_w, fc_b))

    assert logits.shape == (B, 1), logits.shape
    np.testing.assert_allclose(np.asarray(logits), np.asarray(ref), rtol=1e-5, atol=1e-5)
    print("KERNEL_OK")
</pallas_src>

<mosaic_0001>
module attributes {stable_mosaic.version = 11 : i64} {
  func.func @cnn_kernel(%arg0: i32, %arg1: memref<2x32xf32, #tpu.memory_space<vmem>>, %arg2: memref<32x96xf32, #tpu.memory_space<vmem>>, %arg3: memref<1x96xf32, #tpu.memory_space<vmem>>, %arg4: memref<96x1xf32, #tpu.memory_space<vmem>>, %arg5: memref<1xf32, #tpu.memory_space<smem>>, %arg6: memref<2x1xf32, #tpu.memory_space<vmem>>) attributes {dimension_semantics = [#tpu.dimension_semantics<parallel>], iteration_bounds = array<i64: 1>, scalar_prefetch = 0 : i64, scratch_operands = 0 : i64, tpu.core_type = #tpu.core_type<tc>, window_params = [{transform_indices = @transform_0, window_bounds = array<i64: 2, 32>}, {pipeline_mode = #tpu.pipeline_mode<synchronous>, transform_indices = @transform_1, window_bounds = array<i64: 32, 96>}, {pipeline_mode = #tpu.pipeline_mode<synchronous>, transform_indices = @transform_2, window_bounds = array<i64: 1, 96>}, {pipeline_mode = #tpu.pipeline_mode<synchronous>, transform_indices = @transform_3, window_bounds = array<i64: 96, 1>}, {transform_indices = @transform_4, window_bounds = array<i64: 1>}, {transform_indices = @transform_5, window_bounds = array<i64: 2, 1>}]} {
    %c0 = arith.constant 0 : index
    %c0_0 = arith.constant 0 : index
    %0 = vector.load %arg1[%c0, %c0_0] : memref<2x32xf32, #tpu.memory_space<vmem>>, vector<2x32xf32>
    %c0_1 = arith.constant 0 : index
    %c0_2 = arith.constant 0 : index
    %1 = vector.load %arg2[%c0_1, %c0_2] : memref<32x96xf32, #tpu.memory_space<vmem>>, vector<32x96xf32>
    %cst = arith.constant dense<0.000000e+00> : vector<2x96xf32>
    %2 = tpu.matmul %0, %1, %cst {dimension_numbers = #tpu.dot_dimension_numbers<[1], [0], [0], [1], [0, 0, 1, 1], [], []>} : vector<2x32xf32>, vector<32x96xf32>, vector<2x96xf32> -> vector<2x96xf32>
    %c0_3 = arith.constant 0 : index
    %c0_4 = arith.constant 0 : index
    %3 = vector.load %arg3[%c0_3, %c0_4] : memref<1x96xf32, #tpu.memory_space<vmem>>, vector<1x96xf32>
    %4 = vector.broadcast %3 : vector<1x96xf32> to vector<2x96xf32>
    %5 = arith.addf %2, %4 : vector<2x96xf32>
    %cst_5 = arith.constant 0.000000e+00 : f32
    %6 = vector.broadcast %cst_5 : f32 to vector<2x96xf32>
    %7 = arith.maximumf %5, %6 : vector<2x96xf32>
    %c0_6 = arith.constant 0 : index
    %c0_7 = arith.constant 0 : index
    %8 = vector.load %arg4[%c0_6, %c0_7] : memref<96x1xf32, #tpu.memory_space<vmem>>, vector<96x1xf32>
    %cst_8 = arith.constant dense<0.000000e+00> : vector<2x1xf32>
    %9 = tpu.matmul %7, %8, %cst_8 {dimension_numbers = #tpu.dot_dimension_numbers<[1], [0], [0], [1], [0, 0, 1, 1], [], []>} : vector<2x96xf32>, vector<96x1xf32>, vector<2x1xf32> -> vector<2x1xf32>
    %c0_9 = arith.constant 0 : index
    %10 = memref.load %arg5[%c0_9] : memref<1xf32, #tpu.memory_space<smem>>
    %11 = vector.broadcast %10 : f32 to vector<2x1xf32>
    %12 = arith.addf %9, %11 : vector<2x1xf32>
    %c0_10 = arith.constant 0 : index
    %c0_11 = arith.constant 0 : index
    %13 = vector.load %arg6[%c0_10, %c0_11] : memref<2x1xf32, #tpu.memory_space<vmem>>, vector<2x1xf32>
    tpu.vector_store %arg6[%c0_10, %c0_11], %12 {strides = array<i32>} : memref<2x1xf32, #tpu.memory_space<vmem>>, vector<2x1xf32>,
    return
  }
  func.func @transform_0(%arg0: i32) -> (i32, i32) {
    %c0_i32 = arith.constant 0 : i32
    %c0_i32_0 = arith.constant 0 : i32
    return %arg0, %c0_i32 : i32, i32
  }
  func.func @transform_1(%arg0: i32) -> (i32, i32) {
    %c0_i32 = arith.constant 0 : i32
    %c0_i32_0 = arith.constant 0 : i32
    %c0_i32_1 = arith.constant 0 : i32
    return %c0_i32, %c0_i32_0 : i32, i32
  }
  func.func @transform_2(%arg0: i32) -> (i32, i32) {
    %c0_i32 = arith.constant 0 : i32
    %c0_i32_0 = arith.constant 0 : i32
    %c0_i32_1 = arith.constant 0 : i32
    return %c0_i32, %c0_i32_0 : i32, i32
  }
  func.func @transform_3(%arg0: i32) -> (i32, i32) {
    %c0_i32 = arith.constant 0 : i32
    %c0_i32_0 = arith.constant 0 : i32
    %c0_i32_1 = arith.constant 0 : i32
    return %c0_i32, %c0_i32_0 : i32, i32
  }
  func.func @transform_4(%arg0: i32) -> i32 {
    %c0_i32 = arith.constant 0 : i32
    %c0_i32_0 = arith.constant 0 : i32
    return %c0_i32 : i32
  }
  func.func @transform_5(%arg0: i32) -> (i32, i32) {
    %c0_i32 = arith.constant 0 : i32
    %c0_i32_0 = arith.constant 0 : i32
    return %arg0, %c0_i32 : i32, i32
  }
}

</mosaic_0001>

<bundles_post_ra>
// kernel: tpu_custom_call.1
= control target key start
LH: loop header
LB: loop body
LE: loop exit
PB: predicated region body
PF: predicated region fallthrough
CT: control target
= control target key end

     0   :  { %v288_v0 = vmov 0.0|0.0   ;;  %vm289_vm0 = vmmov 0   ;;  %v290_v4 = vmov 0.0   ;;  %vm33_vm1 = vcmask 261120   ;;  %s381_s1 = inlined_call_operand.vmem [shape: f32[32,96], index: 1, kind: input, shape index: {}]   ;;  %s382_s3 = inlined_call_operand.vmem [shape: f32[96,1], index: 3, kind: input, shape index: {}]   ;;  %s383_s0 = inlined_call_operand.vmem [shape: f32[2,32], index: 0, kind: input, shape index: {}]   ;;  %s384_s2 = inlined_call_operand.vmem [shape: f32[1,96], index: 2, kind: input, shape index: {}]   ;;  %s385_s4 = inlined_call_operand.<no memory space> [shape: f32[1], index: 4, kind: input, shape index: {}]   ;;  %s386_s5 = inlined_call_operand.vmem [shape: f32[2,1], index: 5, kind: output, shape index: {}]  }
   0x1   :  { %261 = vmatprep.subr.bf16.mxu0 %v288_v0  ;;  %v22_v1 = vld [vmem:[%s381_s1] sm:$0xff]  ;;  %v23_v2 = vld [vmem:[%s381_s1 + $0x8] sm:$0xff]  ;;  %v24_v3 = vld [vmem:[%s381_s1 + $0x10] sm:$0xff]  ;;  %231 = vmatprep.mubr.msk.f32.mxu0 %vm289_vm0, %v290_v4  ;;  %vm122_vm2 = vcmask 785408   ;;  %v121_v32 = vstv %s385_s4  ;;  %vm196_vm3 = vcmask 1024  }
   0x2   :  { %v262_v5 = vpack.c.bf16 %v23_v2, %v22_v1  ;;  %v25_v6 = vld [vmem:[%s381_s1 + $0x18] sm:$0xff]  ;;  %267 = vmatprep.subr.bf16.mxu1 %v288_v0  ;;  %v108_v7 = vld [vmem:[%s382_s3] sm:$0xff]  ;;  %258 = vmatprep.mubr.msk.f32.mxu1 %vm289_vm0, %v290_v4  ;;  %v109_v8 = vld [vmem:[%s382_s3 + $0x8] sm:$0xff] }
   0x3   :  { %v110_v9 = vld [vmem:[%s382_s3 + $0x10] sm:$0xff]  ;;  %v111_v10 = vld [vmem:[%s382_s3 + $0x18] sm:$0xff]  ;;  %v265_v11 = vpack.c.bf16 %v25_v6, %v24_v3  ;;  %v268_v12 = vpack.c.bf16 %v109_v8, %v108_v7  ;;  %v112_v14 = vld [vmem:[%s382_s3 + $0x20] sm:$0xff] }
   0x4   :  { %263 = vmatpush3.bf16.msra.mxu0 %v262_v5  ;;  %v271_v13 = vpack.c.bf16 %v111_v10, %v110_v9  ;;  %v113_v15 = vld [vmem:[%s382_s3 + $0x28] sm:$0xff]  ;;  %v21_v16 = vld [vmem:[%s383_s0] sm:$0x3]  ;;  %v114_v18 = vld [vmem:[%s382_s3 + $0x30] sm:$0xff] }
   0x5   :  { %264 = vmatprep.subr.bf16.mxu0 %v288_v0  ;;  %269 = vmatpush3.bf16.msra.mxu1 %v268_v12  ;;  %v274_v17 = vpack.c.bf16 %v113_v15, %v112_v14  ;;  %v115_v19 = vld [vmem:[%s382_s3 + $0x38] sm:$0xff]  ;;  %v116_v21 = vld [vmem:[%s382_s3 + $0x40] sm:$0xff]  ;;  %v117_v22 = vld [vmem:[%s382_s3 + $0x48] sm:$0xff] }
   0x6   :  { %270 = vmatprep.subr.bf16.mxu1 %v288_v0  ;;  %v277_v20 = vpack.c.bf16 %v115_v19, %v114_v18  ;;  %v280_v23 = vpack.c.bf16 %v117_v22, %v116_v21  ;;  %v118_v24 = vld [vmem:[%s382_s3 + $0x50] sm:$0xff]  ;;  %v119_v25 = vld [vmem:[%s382_s3 + $0x58] sm:$0xff]  ;;  %v202_v27 = vld [vmem:[%s384_s2] ss:$0 sm:$0xff] }
   0x7   :  { %v283_v26 = vpack.c.bf16 %v119_v25, %v118_v24 }
   0x8   :  { %266 = vmatpush3.bf16.msra.mxu0 %v265_v11 }
   0x9   :  { %272 = vmatpush3.bf16.msra.mxu1 %v271_v13 }
   0xa   :  { %273 = vmatprep.subr.bf16.mxu1 %v288_v0 }
   0xb   :  { %232 = vmatmul.mubr.msk.f32.vlgmr.msra.gmra.mrb[0].mxu0 %vm33_vm1, %v21_v16 }
   0xd   :  { %275 = vmatpush3.bf16.msra.mxu1 %v274_v17 }
   0xe   :  { %276 = vmatprep.subr.bf16.mxu1 %v288_v0 }
  0x11   :  { %278 = vmatpush3.bf16.msra.mxu1 %v277_v20 }
  0x12   :  { %279 = vmatprep.subr.bf16.mxu1 %v288_v0 }
  0x15   :  { %281 = vmatpush3.bf16.msra.mxu1 %v280_v23 }
  0x16   :  { %282 = vmatprep.subr.bf16.mxu1 %v288_v0 }
  0x19   :  { %284 = vmatpush3.bf16.msra.mxu1 %v283_v26 }
  0xde   :  { %v103_v28 = vpop.f32.mrb[0].mxu0 }
  0xdf   :  { %v104_v29 = vadd.f32 %v202_v27, %v103_v28  ;;  %v233_v30 = vpop.f32.mrb[1].mxu0 }
  0xe1   :  { %v107_v31 = vmax.f32 %v104_v29, 0.0 }
  0xe3   :  { %259 = vmatmul.mubr.msk.f32.vlgmr.msra.gmra.mrb[0].mxu1 %vm122_vm2, %v107_v31 }
 0x1b6   :  { %v192_v33 = vpop.f32.mrb[0].mxu1 }
 0x1b7   :  { %v193_v34 = vadd.f32 %v192_v33, %v121_v32  ;;  %v260_v35 = vpop.f32.mrb[1].mxu1 }
 0x1b9   :  { %197 = vst.msk [vmem:[%s386_s5] sm:$0x3] %vm196_vm3, %v193_v34 }

</bundles_post_ra>
